<compile_context>
chip_gen: v7x
topology: tpu7x:2x2x1
jax: 0.10.0
libtpu: 0.0.40
codegen_flags: <defaults>
</compile_context>

<pallas_src>
import jax
import jax.numpy as jnp
from jax.experimental import pallas as pl
from jax.experimental.pallas import tpu as pltpu


def genre_classifier_kernel(x_ref,
                            w1_ref, b1_ref,
                            w2_ref, b2_ref,
                            w3_ref, b3_ref,
                            w4_ref, b4_ref,
                            out_ref):
    """Fused 4-layer MLP + softmax over one batch tile.

    x arrives f32 and is cast to bf16 in-kernel; matmuls accumulate in f32;
    biases and the softmax stay f32.  The genre axis is padded to 128 lanes
    (zero weight columns, -1e30 bias) so the output store is lane-dense.
    """
    x = x_ref[...].astype(jnp.bfloat16)

    # Layer 1: Linear(input_dim -> 256) + ReLU     (Dropout = identity at eval)
    h = jnp.dot(x, w1_ref[...], preferred_element_type=jnp.float32) + b1_ref[...]
    h = jnp.maximum(h, 0.0).astype(jnp.bfloat16)

    # Layer 2: Linear(256 -> 128) + ReLU           (Dropout = identity at eval)
    h = jnp.dot(h, w2_ref[...], preferred_element_type=jnp.float32) + b2_ref[...]
    h = jnp.maximum(h, 0.0).astype(jnp.bfloat16)

    # Layer 3: Linear(128 -> 64) + ReLU
    h = jnp.dot(h, w3_ref[...], preferred_element_type=jnp.float32) + b3_ref[...]
    h = jnp.maximum(h, 0.0).astype(jnp.bfloat16)

    # Layer 4: Linear(64 -> 128 padded); padded logits equal -1e30 from b4 pad.
    logits = jnp.dot(h, w4_ref[...], preferred_element_type=jnp.float32) + b4_ref[...]

    # Softmax over the (padded) genre axis in f32; reciprocal on the EUP slot.
    m = jnp.max(logits, axis=-1, keepdims=True)
    e = jnp.exp(logits - m)               # exp(-1e30 - m) underflows to exactly 0
    inv = pl.reciprocal(jnp.sum(e, axis=-1, keepdims=True), approx=True)
    out_ref[...] = (e * inv).astype(out_ref.dtype)


def genre_classifier_forward(x, params, *, batch_tile=2048):
    """x: [B, input_dim] float32. params: dict of (W_i [in, out] f32, b_i [1, out] f32)."""
    B, input_dim = x.shape
    w1, b1 = params["w1"], params["b1"]
    w2, b2 = params["w2"], params["b2"]
    w3, b3 = params["w3"], params["b3"]
    w4, b4 = params["w4"], params["b4"]
    num_genres = w4.shape[1]

    # --- lane-dense output: pad the genre axis to a multiple of 128 ---------
    n_pad = ((num_genres + 127) // 128) * 128
    w4p = jnp.zeros((w4.shape[0], n_pad), jnp.float32).at[:, :num_genres].set(w4)
    b4p = jnp.full((1, n_pad), -1e30, jnp.float32).at[:, :num_genres].set(b4)

    # --- bf16 weights for the MXU (tiny, one-time); biases stay f32 ---------
    w1 = w1.astype(jnp.bfloat16)
    w2 = w2.astype(jnp.bfloat16)
    w3 = w3.astype(jnp.bfloat16)
    w4p = w4p.astype(jnp.bfloat16)
    b1 = b1.astype(jnp.float32)
    b2 = b2.astype(jnp.float32)
    b3 = b3.astype(jnp.float32)
    b4p = b4p.astype(jnp.float32)

    # --- batch tile: multiple of 16 (bf16 sublane packing); give the grid
    #     >=2 steps when the batch allows it (v7x has 2 TensorCores), but do
    #     not shrink the tile below that (grid steps are sequential per-core).
    bt = max(16, (int(batch_tile) // 16) * 16)
    half = (((B + 1) // 2 + 15) // 16) * 16
    bt = min(bt, max(16, half))
    B_pad = ((B + bt - 1) // bt) * bt
    if B_pad != B:
        x = jnp.pad(x, ((0, B_pad - B), (0, 0)))   # zero rows: harmless softmax(bias)
    grid = (B_pad // bt,)

    # Weights/biases are small (~150 KB bf16/f32 total): each is a single full
    # block whose index_map returns the same block every step -> fetched once,
    # resident across all batch-tile grid steps.
    # (pipeline_mode=pl.Buffered(1) would also drop their double-buffering;
    #  skipped here since the VMEM saving is ~150 KB.)
    def full(a):
        return pl.BlockSpec(a.shape, lambda i: (0, 0))

    in_specs = [
        pl.BlockSpec((bt, input_dim), lambda i: (i, 0)),   # raw f32 x tile
        full(w1), full(b1),
        full(w2), full(b2),
        full(w3), full(b3),
        full(w4p), full(b4p),
    ]
    out_spec = pl.BlockSpec((bt, n_pad), lambda i: (i, 0))

    out = pl.pallas_call(
        genre_classifier_kernel,
        out_shape=jax.ShapeDtypeStruct((B_pad, n_pad), jnp.float32),
        grid_spec=pltpu.PrefetchScalarGridSpec(
            num_scalar_prefetch=0,
            grid=grid,
            in_specs=in_specs,
            out_specs=out_spec,
        ),
        compiler_params=pltpu.CompilerParams(
            dimension_semantics=("parallel",),
            vmem_limit_bytes=32 * 1024 * 1024,
        ),
    )(x, w1, b1, w2, b2, w3, b3, w4p, b4p)

    return out[:B, :num_genres]


def init_params(key, input_dim=100, num_genres=10):
    """Deterministic synthetic parameters (same shapes as the PyTorch module)."""
    dims = [(input_dim, 256), (256, 128), (128, 64), (64, num_genres)]
    params = {}
    for idx, (fan_in, fan_out) in enumerate(dims, start=1):
        key, kw, kb = jax.random.split(key, 3)
        bound = 1.0 / jnp.sqrt(fan_in)
        params[f"w{idx}"] = jax.random.uniform(
            kw, (fan_in, fan_out), jnp.float32, -bound, bound)
        params[f"b{idx}"] = jax.random.uniform(
            kb, (1, fan_out), jnp.float32, -bound, bound)
    return params


def reference_forward(x, params):
    """Pure-JAX f32 reference (matches the PyTorch eval-mode forward)."""
    h = x
    for i in range(1, 4):
        h = jnp.maximum(h @ params[f"w{i}"] + params[f"b{i}"], 0.0)
    logits = h @ params["w4"] + params["b4"]
    return jax.nn.softmax(logits, axis=1)


if __name__ == "__main__":
    key = jax.random.PRNGKey(0)
    key, kx = jax.random.split(key)

    input_dim, num_genres, batch = 100, 10, 32
    params = init_params(key, input_dim=input_dim, num_genres=num_genres)
    x = jax.random.normal(kx, (batch, input_dim), dtype=jnp.float32)

    probs = genre_classifier_forward(x, params)
    probs = jax.block_until_ready(probs)

    # sanity: shape, softmax rows ~sum to 1 (approx reciprocal -> loose tol),
    # and agreement with the f32 reference (bf16 matmul operands -> loose tol).
    assert probs.shape == (batch, num_genres)
    row_sums = jnp.sum(probs, axis=1)
    assert bool(jnp.allclose(row_sums, 1.0, atol=1e-2))
    ref = reference_forward(x, params)
    assert bool(jnp.allclose(probs, ref, atol=2e-2))

    print("KERNEL_OK")
</pallas_src>

<mosaic_0001>
module attributes {stable_mosaic.version = 11 : i64} {
  func.func @genre_classifier_kernel(%arg0: i32, %arg1: memref<16x100xf32, #tpu.memory_space<vmem>>, %arg2: memref<100x256xbf16, #tpu.memory_space<vmem>>, %arg3: memref<1x256xf32, #tpu.memory_space<vmem>>, %arg4: memref<256x128xbf16, #tpu.memory_space<vmem>>, %arg5: memref<1x128xf32, #tpu.memory_space<vmem>>, %arg6: memref<128x64xbf16, #tpu.memory_space<vmem>>, %arg7: memref<1x64xf32, #tpu.memory_space<vmem>>, %arg8: memref<64x128xbf16, #tpu.memory_space<vmem>>, %arg9: memref<1x128xf32, #tpu.memory_space<vmem>>, %arg10: memref<16x128xf32, #tpu.memory_space<vmem>>) attributes {dimension_semantics = [#tpu.dimension_semantics<parallel>], iteration_bounds = array<i64: 2>, scalar_prefetch = 0 : i64, scratch_operands = 0 : i64, tpu.core_type = #tpu.core_type<tc>, window_params = [{transform_indices = @transform_0, window_bounds = array<i64: 16, 100>}, {pipeline_mode = #tpu.pipeline_mode<synchronous>, transform_indices = @transform_1, window_bounds = array<i64: 100, 256>}, {pipeline_mode = #tpu.pipeline_mode<synchronous>, transform_indices = @transform_2, window_bounds = array<i64: 1, 256>}, {pipeline_mode = #tpu.pipeline_mode<synchronous>, transform_indices = @transform_3, window_bounds = array<i64: 256, 128>}, {pipeline_mode = #tpu.pipeline_mode<synchronous>, transform_indices = @transform_4, window_bounds = array<i64: 1, 128>}, {pipeline_mode = #tpu.pipeline_mode<synchronous>, transform_indices = @transform_5, window_bounds = array<i64: 128, 64>}, {pipeline_mode = #tpu.pipeline_mode<synchronous>, transform_indices = @transform_6, window_bounds = array<i64: 1, 64>}, {pipeline_mode = #tpu.pipeline_mode<synchronous>, transform_indices = @transform_7, window_bounds = array<i64: 64, 128>}, {pipeline_mode = #tpu.pipeline_mode<synchronous>, transform_indices = @transform_8, window_bounds = array<i64: 1, 128>}, {transform_indices = @transform_9, window_bounds = array<i64: 16, 128>}]} {
    %c0 = arith.constant 0 : index
    %c0_0 = arith.constant 0 : index
    %0 = vector.load %arg1[%c0, %c0_0] : memref<16x100xf32, #tpu.memory_space<vmem>>, vector<16x100xf32>
    %1 = arith.truncf %0 : vector<16x100xf32> to vector<16x100xbf16>
    %c0_1 = arith.constant 0 : index
    %c0_2 = arith.constant 0 : index
    %2 = vector.load %arg2[%c0_1, %c0_2] : memref<100x256xbf16, #tpu.memory_space<vmem>>, vector<100x256xbf16>
    %cst = arith.constant dense<0.000000e+00> : vector<16x256xf32>
    %3 = tpu.matmul %1, %2, %cst {dimension_numbers = #tpu.dot_dimension_numbers<[1], [0], [0], [1], [0, 0, 1, 1], [], []>} : vector<16x100xbf16>, vector<100x256xbf16>, vector<16x256xf32> -> vector<16x256xf32>
    %c0_3 = arith.constant 0 : index
    %c0_4 = arith.constant 0 : index
    %4 = vector.load %arg3[%c0_3, %c0_4] : memref<1x256xf32, #tpu.memory_space<vmem>>, vector<1x256xf32>
    %5 = vector.broadcast %4 : vector<1x256xf32> to vector<16x256xf32>
    %6 = arith.addf %3, %5 : vector<16x256xf32>
    %cst_5 = arith.constant 0.000000e+00 : f32
    %7 = vector.broadcast %cst_5 : f32 to vector<16x256xf32>
    %8 = arith.maximumf %6, %7 : vector<16x256xf32>
    %9 = arith.truncf %8 : vector<16x256xf32> to vector<16x256xbf16>
    %c0_6 = arith.constant 0 : index
    %c0_7 = arith.constant 0 : index
    %10 = vector.load %arg4[%c0_6, %c0_7] : memref<256x128xbf16, #tpu.memory_space<vmem>>, vector<256x128xbf16>
    %cst_8 = arith.constant dense<0.000000e+00> : vector<16x128xf32>
    %11 = tpu.matmul %9, %10, %cst_8 {dimension_numbers = #tpu.dot_dimension_numbers<[1], [0], [0], [1], [0, 0, 1, 1], [], []>} : vector<16x256xbf16>, vector<256x128xbf16>, vector<16x128xf32> -> vector<16x128xf32>
    %c0_9 = arith.constant 0 : index
    %c0_10 = arith.constant 0 : index
    %12 = vector.load %arg5[%c0_9, %c0_10] : memref<1x128xf32, #tpu.memory_space<vmem>>, vector<1x128xf32>
    %13 = vector.broadcast %12 : vector<1x128xf32> to vector<16x128xf32>
    %14 = arith.addf %11, %13 : vector<16x128xf32>
    %cst_11 = arith.constant 0.000000e+00 : f32
    %15 = vector.broadcast %cst_11 : f32 to vector<16x128xf32>
    %16 = arith.maximumf %14, %15 : vector<16x128xf32>
    %17 = arith.truncf %16 : vector<16x128xf32> to vector<16x128xbf16>
    %c0_12 = arith.constant 0 : index
    %c0_13 = arith.constant 0 : index
    %18 = vector.load %arg6[%c0_12, %c0_13] : memref<128x64xbf16, #tpu.memory_space<vmem>>, vector<128x64xbf16>
    %cst_14 = arith.constant dense<0.000000e+00> : vector<16x64xf32>
    %19 = tpu.matmul %17, %18, %cst_14 {dimension_numbers = #tpu.dot_dimension_numbers<[1], [0], [0], [1], [0, 0, 1, 1], [], []>} : vector<16x128xbf16>, vector<128x64xbf16>, vector<16x64xf32> -> vector<16x64xf32>
    %c0_15 = arith.constant 0 : index
    %c0_16 = arith.constant 0 : index
    %20 = vector.load %arg7[%c0_15, %c0_16] : memref<1x64xf32, #tpu.memory_space<vmem>>, vector<1x64xf32>
    %21 = vector.broadcast %20 : vector<1x64xf32> to vector<16x64xf32>
    %22 = arith.addf %19, %21 : vector<16x64xf32>
    %cst_17 = arith.constant 0.000000e+00 : f32
    %23 = vector.broadcast %cst_17 : f32 to vector<16x64xf32>
    %24 = arith.maximumf %22, %23 : vector<16x64xf32>
    %25 = arith.truncf %24 : vector<16x64xf32> to vector<16x64xbf16>
    %c0_18 = arith.constant 0 : index
    %c0_19 = arith.constant 0 : index
    %26 = vector.load %arg8[%c0_18, %c0_19] : memref<64x128xbf16, #tpu.memory_space<vmem>>, vector<64x128xbf16>
    %cst_20 = arith.constant dense<0.000000e+00> : vector<16x128xf32>
    %27 = tpu.matmul %25, %26, %cst_20 {dimension_numbers = #tpu.dot_dimension_numbers<[1], [0], [0], [1], [0, 0, 1, 1], [], []>} : vector<16x64xbf16>, vector<64x128xbf16>, vector<16x128xf32> -> vector<16x128xf32>
    %c0_21 = arith.constant 0 : index
    %c0_22 = arith.constant 0 : index
    %28 = vector.load %arg9[%c0_21, %c0_22] : memref<1x128xf32, #tpu.memory_space<vmem>>, vector<1x128xf32>
    %29 = vector.broadcast %28 : vector<1x128xf32> to vector<16x128xf32>
    %30 = arith.addf %27, %29 : vector<16x128xf32>
    %cst_23 = arith.constant dense<0xFF800000> : vector<16xf32>
    %31 = vector.multi_reduction <maximumf>, %30, %cst_23 [1] : vector<16x128xf32> to vector<16xf32>
    %32 = vector.shape_cast %31 : vector<16xf32> to vector<16x1xf32>
    %33 = vector.broadcast %32 : vector<16x1xf32> to vector<16x128xf32>
    %34 = arith.subf %30, %33 : vector<16x128xf32>
    %35 = math.exp %34 : vector<16x128xf32>
    %cst_24 = arith.constant dense<0.000000e+00> : vector<16xf32>
    %36 = vector.multi_reduction <add>, %35, %cst_24 [1] : vector<16x128xf32> to vector<16xf32>
    %37 = vector.shape_cast %36 : vector<16xf32> to vector<16x1xf32>
    %38 = tpu.reciprocal %37 {approx = true} : vector<16x1xf32> -> vector<16x1xf32>
    %39 = vector.broadcast %38 : vector<16x1xf32> to vector<16x128xf32>
    %40 = arith.mulf %35, %39 : vector<16x128xf32>
    %c0_25 = arith.constant 0 : index
    %c0_26 = arith.constant 0 : index
    %41 = vector.load %arg10[%c0_25, %c0_26] : memref<16x128xf32, #tpu.memory_space<vmem>>, vector<16x128xf32>
    tpu.vector_store %arg10[%c0_25, %c0_26], %40 {strides = array<i32>} : memref<16x128xf32, #tpu.memory_space<vmem>>, vector<16x128xf32>,
    return
  }
  func.func @transform_0(%arg0: i32) -> (i32, i32) {
    %c0_i32 = arith.constant 0 : i32
    %c0_i32_0 = arith.constant 0 : i32
    return %arg0, %c0_i32 : i32, i32
  }
  func.func @transform_1(%arg0: i32) -> (i32, i32) {
    %c0_i32 = arith.constant 0 : i32
    %c0_i32_0 = arith.constant 0 : i32
    %c0_i32_1 = arith.constant 0 : i32
    return %c0_i32, %c0_i32_0 : i32, i32
  }
  func.func @transform_2(%arg0: i32) -> (i32, i32) {
    %c0_i32 = arith.constant 0 : i32
    %c0_i32_0 = arith.constant 0 : i32
    %c0_i32_1 = arith.constant 0 : i32
    return %c0_i32, %c0_i32_0 : i32, i32
  }
  func.func @transform_3(%arg0: i32) -> (i32, i32) {
    %c0_i32 = arith.constant 0 : i32
    %c0_i32_0 = arith.constant 0 : i32
    %c0_i32_1 = arith.constant 0 : i32
    return %c0_i32, %c0_i32_0 : i32, i32
  }
  func.func @transform_4(%arg0: i32) -> (i32, i32) {
    %c0_i32 = arith.constant 0 : i32
    %c0_i32_0 = arith.constant 0 : i32
    %c0_i32_1 = arith.constant 0 : i32
    return %c0_i32, %c0_i32_0 : i32, i32
  }
  func.func @transform_5(%arg0: i32) -> (i32, i32) {
    %c0_i32 = arith.constant 0 : i32
    %c0_i32_0 = arith.constant 0 : i32
    %c0_i32_1 = arith.constant 0 : i32
    return %c0_i32, %c0_i32_0 : i32, i32
  }
  func.func @transform_6(%arg0: i32) -> (i32, i32) {
    %c0_i32 = arith.constant 0 : i32
    %c0_i32_0 = arith.constant 0 : i32
    %c0_i32_1 = arith.constant 0 : i32
    return %c0_i32, %c0_i32_0 : i32, i32
  }
  func.func @transform_7(%arg0: i32) -> (i32, i32) {
    %c0_i32 = arith.constant 0 : i32
    %c0_i32_0 = arith.constant 0 : i32
    %c0_i32_1 = arith.constant 0 : i32
    return %c0_i32, %c0_i32_0 : i32, i32
  }
  func.func @transform_8(%arg0: i32) -> (i32, i32) {
    %c0_i32 = arith.constant 0 : i32
    %c0_i32_0 = arith.constant 0 : i32
    %c0_i32_1 = arith.constant 0 : i32
    return %c0_i32, %c0_i32_0 : i32, i32
  }
  func.func @transform_9(%arg0: i32) -> (i32, i32) {
    %c0_i32 = arith.constant 0 : i32
    %c0_i32_0 = arith.constant 0 : i32
    return %arg0, %c0_i32 : i32, i32
  }
}

</mosaic_0001>

<bundles_post_ra>
// kernel: tpu_custom_call.1
= control target key start
LH: loop header
LB: loop body
LE: loop exit
PB: predicated region body
PF: predicated region fallthrough
CT: control target
= control target key end

     0   :  { %14 = vsyncpa [#allocation3], 0  ;;  %s1701_s0 = inlined_call_operand.vmem [shape: f32[32,100], index: 0, kind: input, shape index: {}]   ;;  %s1702_s1 = inlined_call_operand.hbm [shape: bf16[100,256], index: 1, kind: input, shape index: {}]   ;;  %s1703_s2 = inlined_call_operand.vmem [shape: f32[1,256], index: 2, kind: input, shape index: {}]   ;;  %s1704_s3 = inlined_call_operand.hbm [shape: bf16[256,128], index: 3, kind: input, shape index: {}]   ;;  %s1705_s4 = inlined_call_operand.vmem [shape: f32[1,128], index: 4, kind: input, shape index: {}]   ;;  %s1706_s5 = inlined_call_operand.vmem [shape: bf16[128,64], index: 5, kind: input, shape index: {}]   ;;  %s1707_s6 = inlined_call_operand.vmem [shape: f32[1,64], index: 6, kind: input, shape index: {}]   ;;  %s1708_s7 = inlined_call_operand.vmem [shape: bf16[64,128], index: 7, kind: input, shape index: {}]   ;;  %s1709_s8 = inlined_call_operand.vmem [shape: f32[1,128], index: 8, kind: input, shape index: {}]   ;;  %s1710_s9 = inlined_call_operand.hbm [shape: f32[32,128], index: 9, kind: output, shape index: {}]  }
   0x1   :  { %15 = vsyncpa [#allocation6], 0 }
   0x2   :  { %16 = vsyncpa [#allocation4], 0 }
   0x3   :  { %18 = vsyncpa [#allocation4 + $0x1], 0  ;;  %s1462_s30 = smov 0   ;;  %s1464_s10 = smov 0  }
   0x4   :  { %s1466_s11 = smov 0   ;;  %s1468_s12 = smov 0  }
   0x5 LB: > { %1717 = sst [smem:[#allocation11_spill]] %s1394_s11  ;;  %s1483_s13 = sadd.s32 4294967295, %s1398_s12   ;;  %s1398_s12 = sphi %s1468_s12, %s1731_s12   ;;  %s1394_s11 = sphi %s1466_s11, %s1733_s11   ;;  %s1390_s10 = sphi %s1464_s10, %s1735_s10   ;;  %s1386_s30 = sphi %s1462_s30, %s1734_s30  }
   0x6   : > { %s1014_s14 = sadd.s32 4294967294, %s1398_s12   ;;  %s1487_s15 = sadd.s32 1, %s1398_s12  }
   0x7   : > { %1718 = sst [smem:[#allocation12_spill]] %s1487_s15  ;;  %s225_s16 = sadd.s32 1, %s1394_s11 }
   0x8   : > { %s222_s17 = ssub.s32 %s1398_s12, %s1487_s15  ;;  %p235_p0 = scmp.ne.s32.totalorder %s1394_s11, %s1390_s10 }
   0x9   : > { %p223_p1 = scmp.eq.s32.totalorder %s222_s17, 0  ;;  %p236_p2 = scmp.eq.s32.totalorder %s1483_s13, 1 }
   0xa   : > { %p241_p3 = scmp.ne.s32.totalorder %s1390_s10, %s1386_s30  ;;  %p242_p4 = scmp.eq.s32.totalorder %s1014_s14, 1 }
   0xb   : > { %s1498_s18 = scalar_select %p223_p1, %s1394_s11, %s225_s16  }
   0xc   : > { %p1500_p5 = por %p236_p2, %p235_p0  ;;  %p1504_p6 = por %p242_p4, %p241_p3 }
   0xd   : > { %1719 = sst [smem:[#allocation13_spill]] %s1498_s18  ;;  %p1015_p7 = scmp.ge.s32.totalorder %s1398_s12, 1 }
   0xe   : > { %s1720_s19 = scalar_select %p1500_p5, 1, 0 }
   0xf   : > { %s1721_s20 = scalar_select %p1504_p6, 1, 0 }
  0x10   : > { %p249_p8 = scmp.lt.s32.totalorder %s1398_s12, 3  ;;  %p1711_p9 = scmp.eq.s32.totalorder %s1483_s13, 0 }
  0x11   : > { %s1400_s22 = smov [#allocation2]   ;;  %s1401_s25 = smov [#allocation5]  }
  0x12   : > { %p1511_p10 = pnand %p1015_p7, %p249_p8  ;;  %s261_s23 = sshll.u32 %s1400_s22, 4  ;;  %s262_s23 = int_to_ptr.vmem [resolvable:$true] %s261_s23 }
  0x13   : > { %s277_s26 = sshll.u32 %s1401_s25, 4  ;;  %s1272_s29 = scalar_lea.hbm %s1702_s1, 1664  ;;  %s1523_s26 = int_to_ptr.vmem [resolvable:$true] %s277_s26 }
  0x14   : > { %s1722_s21 = scalar_select %p1511_p10, 1, 0 }
  0x15   : > { %p1157_p11 = pneg %p1511_p10  ;;  %p1273_p13 = scmp.ne.s32.totalorder %s1702_s1, %s1272_s29 }
  0x16   : > { %p1279_p3 = scmp.lt.u32.totalorder %s1272_s29, %s1702_s1 }
  0x17   : > { %p1519_p12 = pnand %p1711_p9, %p1157_p11 }
  0x19   : > { %p1274_p0 = pneg %p1519_p12 }
  0x1b   : > { %p1275_p1 = pnand %p1274_p0, %p1273_p13 }
  0x1d   : > { %p1276_p2 = pneg %p1275_p1 }
  0x1f   : > { %p1281_p4 = pnand %p1279_p3, %p1276_p2 }
  0x21   : > { %1284 = shalt.err (!%p1281_p4)
}
  0x22   : > { %s1285_s25 = scalar_lea.vmem %s262_s23, 1664  ;;  %p1293_p9 = scmp.lt.s32.totalorder %s262_s23, %s262_s23 }
  0x23   : > { %p1286_p7 = scmp.ne.s32.totalorder %s262_s23, %s1285_s25  ;;  %p1294_p6 = scmp.lt.s32.totalorder %s1285_s25, %s1285_s25 }
  0x25   : > { %p1288_p8 = pnand %p1286_p7, %p1274_p0  ;;  %p1295_p5 = por %p1294_p6, %p1293_p9 }
  0x27   : > { %p1289_p11 = pneg %p1288_p8 }
  0x29   : > { %p1296_p10 = pnand %p1295_p5, %p1289_p11 }
  0x2b   : > { %1299 = shalt.err (!%p1296_p10)
}
  0x2c   : > { %s1402_s27 = smov 128   ;;  %s1403_s28 = smov 8  }
  0x2d   : > { %1160 = dma.hbm_to_vmem [thread:$0]  (!%p1519_p12), %s1702_s1, 1664, %s262_s23, [#allocation3], %s1402_s27, %s1402_s27, %s1403_s28  }
  0x2e   : > { %s1300_s22 = scalar_lea.hbm %s1704_s3, 2048 }
  0x2f   : > { %p1301_p13 = scmp.ne.s32.totalorder %s1704_s3, %s1300_s22  ;;  %p1307_p9 = scmp.lt.u32.totalorder %s1300_s22, %s1704_s3 }
  0x31   : > { %p1303_p5 = pnand %p1301_p13, %p1274_p0 }
  0x33   : > { %p1304_p6 = pneg %p1303_p5 }
  0x35   : > { %p1309_p10 = pnand %p1307_p9, %p1304_p6 }
  0x37   : > { %1312 = shalt.err (!%p1309_p10)
}
  0x38   : > { %s1313_s23 = scalar_lea.vmem %s1523_s26, 2048  ;;  %p1321_p4 = scmp.lt.s32.totalorder %s1523_s26, %s1523_s26 }
  0x39   : > { %p1314_p1 = scmp.ne.s32.totalorder %s1523_s26, %s1313_s23  ;;  %p1322_p7 = scmp.lt.s32.totalorder %s1313_s23, %s1313_s23 }
  0x3b   : > { %p1316_p2 = pnand %p1314_p1, %p1274_p0  ;;  %p1323_p8 = por %p1322_p7, %p1321_p4 }
  0x3d   : > { %p1317_p3 = pneg %p1316_p2 }
  0x3f   : > { %p1324_p11 = pnand %p1323_p8, %p1317_p3 }
  0x41   : > { %1327 = shalt.err (!%p1324_p11)
}
  0x42   : > { %s1404_s11 = smov 64   ;;  %s1405_s15 = smov 4  }
  0x43   : > { %1163 = dma.hbm_to_vmem [thread:$0]  (!%p1519_p12), %s1704_s3, 2048, %s1523_s26, [#allocation6], %s1404_s11, %s1404_s11, %s1405_s15  }
  0x44   : > { %p1724_p13 = scmp.ne.s32.totalorder %s1722_s21, 0 }
  0x45   : > { %p1725_p0 = scmp.eq.s32.totalorder (!%p1724_p13), %s1483_s13, 0 }
  0x46   : > { %317 = sbr.rel (%p1724_p13) target bundleno = 1320 (0x528), region = 56 }
  0x4d   : > { %1373 = dma.done.wait (%p1725_p0), [#allocation3], 1664   ;;  %p1726_p5 = pmov %p1725_p0 }
  0x4e   : > { %p1727_p6 = pmov %p1725_p0 }
  0x4f   : > { %1375 = vsyncadd (%p1726_p5), [#allocation3], 4294965632 }
  0x50   : > { %1377 = dma.done.wait (%p1727_p6), [#allocation6], 2048   ;;  %p1728_p9 = pmov %p1725_p0 }
  0x51   : > { %v1406_v0 = vmov 0   ;;  %v1216_v1 = vld [vmem:[#allocation2 + $0x4] ss:$8 sps:$4 sm:$0xff]   ;;  %v1218_v2 = vld [vmem:[#allocation2] ss:$8 sps:$4 sm:$0xff]   ;;  %s1023_s21 = sshll.u32 %s1483_s13, 1  ;;  %v383_v42 = vlaneseq }
  0x52   : > { %1379 = vsyncadd (%p1728_p9), [#allocation6], 4294965248  ;;  %501 = vmatprep.mubr.bf16.mxu0 %v1406_v0  ;;  %469 = vmatprep.subr.bf16.mxu0 %v1216_v1  ;;  %v1219_v3 = vld [vmem:[#allocation2 + $0x14] ss:$8 sps:$4 sm:$0xff]   ;;  %v1221_v4 = vld [vmem:[#allocation2 + $0x10] ss:$8 sps:$4 sm:$0xff]  }
  0x53   : > { %470 = vmatpush1.bf16.msra.mxu0 %v1218_v2  ;;  %v1222_v5 = vld [vmem:[#allocation2 + $0x24] ss:$8 sps:$4 sm:$0xff]   ;;  %p358_p12 = scmp.lt.s32.totalorder %s1023_s21, 3  ;;  %v1224_v6 = vld [vmem:[#allocation2 + $0x20] ss:$8 sps:$4 sm:$0xff]   ;;  %v1238_v13 = vld [vmem:[#allocation5 + $0x48] sm:$0xff]  }
  0x54   : > { %471 = vmatprep.subr.bf16.mxu0 %v1219_v3  ;;  %v1225_v7 = vld [vmem:[#allocation2 + $0x34] ss:$8 sps:$4 sm:$0xff]   ;;  %v1227_v8 = vld [vmem:[#allocation2 + $0x30] ss:$8 sps:$4 sm:$0xff]   ;;  %v1236_v9 = vld [vmem:[#allocation5 + $0x40] sm:$0xff]   ;;  %vm462_vm0 = vcmask 1041408  }
  0x55   : > { %s1737_s21 = smov (!%p358_p12, %s1023_s21), 3  ;;  %v1228_v10 = vld [vmem:[#allocation2 + $0x44] ss:$8 sps:$4 sm:$0xff]   ;;  %1079 = vmatprep.subr.bf16.mxu1 %v1236_v9  ;;  %v1239_v14 = vld [vmem:[#allocation5 + $0x8] sm:$0xff]   ;;  %v1240_v15 = vld [vmem:[#allocation5 + $0x50] sm:$0xff]   ;;  %vm458_vm1 = vcmask 818176  }
  0x56   : > { %v1237_v11 = vld [vmem:[#allocation5] sm:$0xff]   ;;  %v380_v12 = vld [vmem:[#allocation2 + $0x60] sm:$0x33]  ;;  %s1024_s24 = sshll.u32 %s1737_s21, 3  ;;  %v1231_v17 = vld [vmem:[#allocation2 + $0x54] ss:$8 sps:$4 sm:$0xff]  }
  0x57   : > { %472 = vmatpush1.bf16.msra.mxu0 %v1221_v4  ;;  %1080 = vmatpush3.bf16.msra.mxu1 %v1237_v11  ;;  %v1230_v16 = vld [vmem:[#allocation2 + $0x40] ss:$8 sps:$4 sm:$0xff]   ;;  %v1037_v18 = vcombine.low %v380_v12, %v380_v12  ;;  %v1241_v19 = vld [vmem:[#allocation5 + $0x10] sm:$0xff]   ;;  %s361_s29 = scalar_lea.vmem %s1701_s0, %s1024_s24  ;;  %v1038_v23 = vcombine.high %v380_v12, %v380_v12  ;;  %v1246_v29 = vld [vmem:[#allocation5 + $0x68] sm:$0xff]   ;;  %v1407_v37 = vmov 0.0   ;;  %v384_v43 = vshrl.u32 %v383_v42, 7 }
  0x58   : > { %473 = vmatprep.subr.bf16.mxu0 %v1222_v5  ;;  %1081 = vmatprep.subr.bf16.mxu1 %v1238_v13  ;;  %v1242_v20 = vld [vmem:[#allocation5 + $0x58] sm:$0xff]   ;;  %v1233_v21 = vld [vmem:[#allocation2 + $0x50] ss:$8 sps:$4 sm:$0xff]   ;;  %v1244_v25 = vld [vmem:[#allocation5 + $0x60] sm:$0xff]   ;;  %vm1408_vm2 = vmmov 0   ;;  %vm851_vm3 = vcmask 523264  }
  0x59   : > { %v1243_v22 = vld [vmem:[#allocation5 + $0x18] sm:$0xff]   ;;  %v464_v24 = vsel %vm462_vm0, %v1037_v18, 0  ;;  %v366_v27 = vld [vmem:[%s361_s29 + $0x8] sm:$0xff]  ;;  %v1247_v31 = vld [vmem:[#allocation5 + $0x28] sm:$0xff]   ;;  %v385_v44 = vsub.s32 0, %v384_v43  ;;  %v389_v46 = vsub.s32 1, %v384_v43 }
  0x5a   : > { %v365_v26 = vld [vmem:[%s361_s29] sm:$0xff]  ;;  %v1245_v28 = vld [vmem:[#allocation5 + $0x20] sm:$0xff]   ;;  %v1248_v32 = vld [vmem:[#allocation5 + $0x70] sm:$0xff]   ;;  %s354_s17 = sand.u32 1, %s1390_s10   ;;  %s1078_s25 = sshll.u32 %s1483_s13, 8 }
  0x5b   : > { %474 = vmatpush1.bf16.msra.mxu0 %v1224_v6  ;;  %1082 = vmatpush3.bf16.msra.mxu1 %v1239_v14  ;;  %v367_v30 = vpack.c.bf16 %v366_v27, %v365_v26  ;;  %v1249_v33 = vld [vmem:[#allocation5 + $0x30] sm:$0xff]   ;;  %v1250_v34 = vld [vmem:[#allocation5 + $0x78] sm:$0xff]   ;;  %v1253_v38 = vld [vmem:[%s1706_s5 + $0x8] sm:$0xff]   ;;  %s1022_s22 = sshll.u32 %s354_s17, 4  ;;  %s1656_s27 = scalar_lea.hbm %s1710_s9, %s1078_s25 }
  0x5c   : > { %475 = vmatprep.subr.bf16.mxu0 %v1225_v7  ;;  %1083 = vmatprep.subr.bf16.mxu1 %v1240_v15  ;;  %v1251_v35 = vld [vmem:[#allocation5 + $0x38] sm:$0xff]   ;;  %v1254_v39 = vld [vmem:[%s1706_s5 + $0x10] sm:$0xff]   ;;  %v1255_v40 = vld [vmem:[%s1706_s5 + $0x18] sm:$0xff]   ;;  %s356_s23 = scalar_lea.vmem [#allocation7], %s1022_s22  ;;  %s1660_s21 = scalar_lea.sflag [#allocation4], %s354_s17 }
  0x5d   : > { %v1252_v36 = vld [vmem:[%s1706_s5] sm:$0xff]   ;;  %v1257_v63 = vld [vmem:[%s1706_s5 + $0x28] sm:$0xff]   ;;  %v1258_v0 = vld [vmem:[%s1706_s5 + $0x30] sm:$0xff]   ;;  %s930_s11 = sshll.u32 %s356_s23, 4  ;;  %p1729_p1 = scmp.ne.s32.totalorder %s1720_s19, 0  ;;  %s1658_s11 = int_to_ptr.vmem [resolvable:$true] %s930_s11 }
  0x5e   : > { %v1256_v41 = vld [vmem:[%s1706_s5 + $0x20] sm:$0xff]   ;;  %v1259_v1 = vld [vmem:[%s1706_s5 + $0x38] sm:$0xff]   ;;  %v1261_v3 = vld [vmem:[%s1708_s7 + $0x8] sm:$0xff]   ;;  %s1328_s24 = scalar_lea.vmem %s1658_s11, 256  ;;  %s1409_s13 = smov [#allocation7]  }
  0x5f   : > { %476 = vmatpush1.bf16.msra.mxu0 %v1227_v8  ;;  %1084 = vmatpush3.bf16.msra.mxu1 %v1241_v19  ;;  %v381_v45 = vld [vmem:[%s1703_s2] sm:$0x3]  ;;  %p1329_p10 = scmp.ne.s32.totalorder %s1658_s11, %s1328_s24  ;;  %s1332_s26 = sshll.u32 %s1409_s13, 4  ;;  %s1333_s26 = int_to_ptr.vmem [resolvable:$false] %s1332_s26 }
  0x60   : > { %477 = vmatprep.subr.bf16.mxu0 %v1228_v10  ;;  %1085 = vmatprep.subr.bf16.mxu1 %v1242_v20  ;;  %v386_v47 = vrot.slane %v381_v45, %v385_v44  ;;  %v390_v48 = vrot.slane %v381_v45, %v389_v46  ;;  %v1260_v2 = vld [vmem:[%s1708_s7] sm:$0xff]   ;;  %s1334_s28 = scalar_lea.vmem %s1333_s26, 512  ;;  %p1335_p4 = scmp.lt.s32.totalorder %s1658_s11, %s1333_s26 }
  0x61   : > { %v1041_v5 = vld [vmem:[%s1705_s4] ss:$0 sm:$0xff]  ;;  %p1330_p2 = pnand %p1329_p10, %p1729_p1  ;;  %p1336_p7 = scmp.lt.s32.totalorder %s1334_s28, %s1328_s24 }
  0x62   : > { %v1058_v18 = vld [vmem:[%s1707_s6] ss:$0 sm:$0xff] }
  0x63   : > { %478 = vmatpush1.bf16.msra.mxu0 %v1230_v16  ;;  %1086 = vmatpush3.bf16.msra.mxu1 %v1243_v22  ;;  %v1262_v16 = vld [vmem:[%s1708_s7 + $0x10] sm:$0xff]   ;;  %p1331_p3 = pneg %p1330_p2  ;;  %p1337_p8 = por %p1336_p7, %p1335_p4 }
  0x64   : > { %479 = vmatprep.subr.bf16.mxu0 %v1231_v17  ;;  %1087 = vmatprep.subr.bf16.mxu1 %v1244_v25  ;;  %v1263_v17 = vld [vmem:[%s1708_s7 + $0x18] sm:$0xff]  }
  0x65   : > { %p1338_p11 = pnand %p1337_p8, %p1331_p3 }
  0x67   : > { %480 = vmatpush1.bf16.msra.mxu0 %v1233_v21  ;;  %1088 = vmatpush3.bf16.msra.mxu1 %v1245_v28  ;;  %v1067_v28 = vld [vmem:[%s1709_s8] ss:$0 sm:$0xff] }
  0x68   : > { %1039 = vmatprep.subr.msk.bf16.mxu0 %vm462_vm0, %v1038_v23  ;;  %1089 = vmatprep.subr.bf16.mxu1 %v1246_v29 }
  0x6b   : > { %482 = vmatpush1.bf16.msra.mxu0 %v464_v24  ;;  %1090 = vmatpush3.bf16.msra.mxu1 %v1247_v31 }
  0x6c   : > { %1091 = vmatprep.subr.bf16.mxu1 %v1248_v32  ;;  %1115 = vmatprep.subr.bf16.mxu0 %v1407_v37 }
  0x6e   : > { %1040 = vmatmul.mubr.msk.bf16.vlgmr.msra.gmra.mrb[0].mxu0 %vm458_vm1, %v367_v30 }
  0x6f   : > { %1092 = vmatpush3.bf16.msra.mxu1 %v1249_v33  ;;  %1116 = vmatpush3.bf16.msra.mxu0 %v1252_v36 }
  0x70   : > { %1093 = vmatprep.subr.bf16.mxu1 %v1250_v34  ;;  %1117 = vmatprep.subr.bf16.mxu0 %v1407_v37 }
  0x71   : > { %1131 = vmatprep.mubr.msk.bf16.mxu0 %vm1408_vm2, %v1407_v37 }
  0x73   : > { %1094 = vmatpush3.bf16.msra.mxu1 %v1251_v35  ;;  %1118 = vmatpush3.bf16.msra.mxu0 %v1253_v38 }
  0x74   : > { %1135 = vmatprep.subr.bf16.mxu1 %v1407_v37  ;;  %1119 = vmatprep.subr.bf16.mxu0 %v1407_v37 }
  0x77   : > { %1120 = vmatpush3.bf16.msra.mxu0 %v1254_v39 }
  0x78   : > { %1121 = vmatprep.subr.bf16.mxu0 %v1407_v37 }
  0x7b   : > { %1122 = vmatpush3.bf16.msra.mxu0 %v1255_v40 }
  0x7c   : > { %1123 = vmatprep.subr.bf16.mxu0 %v1407_v37 }
  0x7f   : > { %1124 = vmatpush3.bf16.msra.mxu0 %v1256_v41 }
  0x80   : > { %1125 = vmatprep.subr.bf16.mxu0 %v1407_v37 }
  0x83   : > { %1126 = vmatpush3.bf16.msra.mxu0 %v1257_v63 }
  0x84   : > { %1127 = vmatprep.subr.bf16.mxu0 %v1407_v37 }
  0x87   : > { %1128 = vmatpush3.bf16.msra.mxu0 %v1258_v0 }
  0x88   : > { %1129 = vmatprep.subr.bf16.mxu0 %v1407_v37 }
  0x8b   : > { %1130 = vmatpush3.bf16.msra.mxu0 %v1259_v1 }
 0x141   : > { %v503_v49 = vpop.f32.mrb[0].mxu0 }
 0x142   : > { %v504_v50 = vadd.f32 %v503_v49, %v386_v47  ;;  %v505_v51 = vpop.f32.mrb[1].mxu0 }
 0x143   : > { %v506_v52 = vadd.f32 %v505_v51, %v390_v48  ;;  %v507_v53 = vpop.f32.mrb[2].mxu0 }
 0x144   : > { %v508_v54 = vadd.f32 %v507_v53, %v386_v47  ;;  %v509_v55 = vpop.f32.mrb[3].mxu0  ;;  %v512_v57 = vmax.f32 %v504_v50, 0.0 }
 0x145   : > { %v510_v56 = vadd.f32 %v509_v55, %v390_v48  ;;  %v513_v59 = vmax.f32 %v506_v52, 0.0 }
 0x146   : > { %v514_v58 = vmax.f32 %v508_v54, 0.0 }
 0x147   : > { %v515_v60 = vmax.f32 %v510_v56, 0.0 }
 0x148   : > { %v516_v61 = vpack.c.bf16 %v514_v58, %v512_v57 }
 0x149   : > { %v517_v62 = vpack.c.bf16 %v515_v60, %v513_v59 }
 0x14b   : > { %685 = vmatprep.mubr.bf16.mxu1 %v517_v62 }
 0x14c   : > { %686 = vmatmul.mubr.bf16.vlgmr.msra.gmra.mrb[0].mxu1 %v516_v61 }
 0x14d   : > { %1143 = vmatprep.mubr.msk.bf16.mxu1 %vm1408_vm2, %v1407_v37  ;;  %1136 = vmatpush3.bf16.msra.mxu1 %v1260_v2 }
 0x14e   : > { %1137 = vmatprep.subr.bf16.mxu1 %v1407_v37 }
 0x151   : > { %1138 = vmatpush3.bf16.msra.mxu1 %v1261_v3 }
 0x152   : > { %1139 = vmatprep.subr.bf16.mxu1 %v1407_v37 }
 0x155   : > { %1140 = vmatpush3.bf16.msra.mxu1 %v1262_v16 }
 0x156   : > { %1141 = vmatprep.subr.bf16.mxu1 %v1407_v37 }
 0x159   : > { %1142 = vmatpush3.bf16.msra.mxu1 %v1263_v17 }
 0x21f   : > { %v1095_v4 = vpop.f32.mrb[0].mxu1 }
 0x220   : > { %v1096_v6 = vpop.f32.mrb[1].mxu1 }
 0x221   : > { %v1097_v7 = vadd.f32 %v1096_v6, %v1095_v4  ;;  %v1098_v8 = vpop.f32.mrb[2].mxu1 }
 0x222   : > { %v1099_v9 = vpop.f32.mrb[3].mxu1 }
 0x223   : > { %v688_v10 = vadd.f32 %v1097_v7, %v1041_v5  ;;  %v1100_v11 = vadd.f32 %v1099_v9, %v1098_v8 }
 0x225   : > { %v691_v12 = vadd.f32 %v1100_v11, %v1041_v5  ;;  %v694_v13 = vmax.f32 %v688_v10, 0.0 }
 0x227   : > { %v695_v14 = vmax.f32 %v691_v12, 0.0 }
 0x229   : > { %v696_v15 = vpack.c.bf16 %v695_v14, %v694_v13 }
 0x22b   : > { %1132 = vmatmul.mubr.bf16.vlgmr.msra.gmra.mrb[4].mxu0 %v696_v15 }
 0x2fe   : > { %v802_v19 = vpop.f32.mrb[4].mxu0 }
 0x2ff   : > { %v803_v20 = vadd.f32 %v1058_v18, %v802_v19  ;;  %v1133_v21 = vpop.f32.mrb[5].mxu0 }
 0x300   : > { %v805_v22 = vpop.f32.mrb[6].mxu0 }
 0x301   : > { %v806_v23 = vadd.f32 %v1058_v18, %v805_v22  ;;  %v1134_v24 = vpop.f32.mrb[7].mxu0  ;;  %v809_v25 = vmax.f32 %v803_v20, 0.0 }
 0x303   : > { %v810_v26 = vmax.f32 %v806_v23, 0.0 }
 0x305   : > { %v811_v27 = vpack.c.bf16 %v810_v26, %v809_v25 }
 0x307   : > { %1144 = vmatmul.mubr.msk.bf16.vlgmr.msra.gmra.mrb[4].mxu1 %vm851_vm3, %v811_v27 }
 0x3da   : > { %v889_v29 = vpop.f32.mrb[4].mxu1 }
 0x3db   : > { %v890_v30 = vadd.f32 %v1067_v28, %v889_v29  ;;  %v1145_v31 = vpop.f32.mrb[5].mxu1 }
 0x3dc   : > { %v892_v32 = vpop.f32.mrb[6].mxu1 }
 0x3dd   : > { %896 = vmax.xlane.f32.xlu0 %v890_v30  ;;  %v1146_v33 = vpop.f32.mrb[7].mxu1  ;;  %v893_v34 = vadd.f32 %v1067_v28, %v892_v32 }
 0x3e1   : > { %898 = vmax.xlane.f32.xlu0 %v893_v34 }
 0x46a   : > { %v897_v35 = vpop.xlane.xlu0 %896 }
 0x46b   : > { %v900_v36 = vsub.f32 %v890_v30, %v897_v35 }
 0x46d   : > { %v902_v37 = vmul.f32 1.442695, %v900_v36 }
 0x46e   : > { %v899_v38 = vpop.xlane.xlu0 %898 }
 0x46f   : > { %1264 = vpow2.f32 %v902_v37  ;;  %v901_v39 = vsub.f32 %v893_v34, %v899_v38 }
 0x471   : > { %v904_v40 = vmul.f32 1.442695, %v901_v39 }
 0x473   : > { %1266 = vpow2.f32 %v904_v40 }
 0x479   : > { %v1265_v41 = vpop.eup %1264 }
 0x47a   : > { %906 = vadd.xlane.f32.xlu1 %v1265_v41 }
 0x47d   : > { %v1267_v42 = vpop.eup %1266 }
 0x47e   : > { %908 = vadd.xlane.f32.xlu1 %v1267_v42 }
 0x507   : > { %v907_v43 = vpop.xlane.xlu1 %906 }
 0x508   : > { %1268 = vrcp.f32 %v907_v43 }
 0x50b   : > { %v909_v44 = vpop.xlane.xlu1 %908 }
 0x50c   : > { %1270 = vrcp.f32 %v909_v44 }
 0x512   : > { %v1269_v45 = vpop.eup %1268 }
 0x513   : > { %v912_v46 = vmul.f32 %v1269_v45, %v1265_v41 }
 0x515   : > { %914 = vst [vmem:[%s356_s23] sm:$0xff] %v912_v46 }
 0x516   : > { %v1271_v47 = vpop.eup %1270 }
 0x517   : > { %v913_v48 = vmul.f32 %v1271_v47, %v1267_v42 }
 0x519   : > { %915 = vst [vmem:[%s356_s23 + $0x8] sm:$0xff] %v913_v48 }
 0x51a   : > { %1341 = shalt.err (!%p1338_p11)
}
 0x51b   : > { %s1342_s29 = scalar_lea.hbm %s1656_s27, 256  ;;  %s1346_s17 = scalar_lea.hbm %s1710_s9, 512 }
 0x51c   : > { %p1343_p13 = scmp.ne.s32.totalorder %s1656_s27, %s1342_s29  ;;  %p1347_p6 = scmp.lt.u32.totalorder %s1656_s27, %s1710_s9 }
 0x51d   : > { %p1348_p9 = scmp.lt.u32.totalorder %s1346_s17, %s1342_s29  ;;  %p1350_p10 = scmp.lt.u32.totalorder %s1342_s29, %s1656_s27 }
 0x51e   : > { %p1344_p0 = pnand %p1343_p13, %p1729_p1 }
 0x51f   : > { %p1349_p12 = por %p1348_p9, %p1347_p6 }
 0x520   : > { %p1345_p5 = pneg %p1344_p0 }
 0x521   : > { %p1351_p2 = por %p1350_p10, %p1349_p12 }
 0x523   : > { %p1352_p3 = pnand %p1351_p2, %p1345_p5 }
 0x525   : > { %1355 = shalt.err (!%p1352_p3)
}
 0x526   : > { %s1410_s23 = smov 128   ;;  %s1411_s15 = smov 8  }
 0x527   : > { %1155 = dma.vmem_to_hbm [thread:$0]  (%p1729_p1), %s1658_s11, 256, %s1656_s27, %s1660_s21, %s1410_s23, %s1410_s23, %s1411_s15  }
 0x528 PF: > { %p1172_p4 = scmp.ge.s32.totalorder %s1398_s12, 2  ;;  %s945_s18 = sand.u32 1, %s1386_s30  }
 0x529   : > { %p1730_p7 = scmp.ne.s32.totalorder %s1721_s20, 0  ;;  %s946_s24 = scalar_lea.sflag [#allocation4], %s945_s18 }
 0x52b   : > { %p1165_p8 = pnand %p1172_p4, %p1730_p7 }
 0x52d   : > { %1381 = dma.done.wait (!%p1165_p8), %s946_s24, 256  }
 0x52e   : > { %1383 = vsyncadd (!%p1165_p8), %s946_s24, 4294967040  ;;  %s1731_s12 = sld [smem:[#allocation12_spill]]  ;;  %s1732_s13 = sld [smem:[#allocation11_spill]] }
 0x52f   : > { %s1733_s11 = sld [smem:[#allocation13_spill]]  ;;  %s1734_s30 = smov %s1390_s10 }
 0x534   : > { %p21_p11 = scmp.ge.s32.totalorder %s1731_s12, 4   ;;  %s1735_s10 = smov %s1732_s13 }
 0x536   :  { %23 = sbr.rel (!%p21_p11) target bundleno = 5 (0x5), region = 100 }
 0x53d   :  { %951 = vsyncpa [#allocation3], 1 }
 0x53e   :  { %953 = vsyncpa [#allocation3 + $0x1], 1 }
 0x53f   :  { %954 = vsyncpa [#allocation6], 1 }
 0x540   :  { %955 = vsyncpa [#allocation4], 1 }
 0x541   :  { %957 = vsyncpa [#allocation4 + $0x1], 1 }

</bundles_post_ra>
